<compile_context>
chip_gen: v6e
topology: v6e:2x2x1
jax: 0.10.0
libtpu: 0.0.40
codegen_flags: <defaults>
</compile_context>

<pallas_src>
import functools

import jax
import jax.numpy as jnp
from jax.experimental import pallas as pl
from jax.experimental.pallas import tpu as pltpu

_EPS = 1e-8
_EPS2 = _EPS * _EPS


def _simsiam_loss_jax(P, Z):
    """Pure-JAX reference / fallback matching torch.nn.functional.cosine_similarity."""
    P = P.astype(jnp.float32)
    Z = Z.astype(jnp.float32)
    dot = jnp.sum(P * Z, axis=-1)
    pn = jnp.maximum(jnp.sqrt(jnp.sum(P * P, axis=-1)), _EPS)
    zn = jnp.maximum(jnp.sqrt(jnp.sum(Z * Z, axis=-1)), _EPS)
    return -jnp.mean(dot / (pn * zn))


def _simsiam_loss_kernel(p_ref, z_ref, o_ref, acc_ref, *, total_rows):
    # Grid: (core_slice c, inner reduction step i). Accumulator is per core slice.
    i = pl.program_id(1)

    @pl.when(i == 0)
    def _():
        acc_ref[...] = jnp.zeros_like(acc_ref)

    p = p_ref[...].astype(jnp.float32)
    z = z_ref[...].astype(jnp.float32)

    # Per-row dot and squared norms (lane-axis reductions).
    dot = jnp.sum(p * z, axis=-1, keepdims=True)      # (tn, 1)
    p2 = jnp.sum(p * p, axis=-1, keepdims=True)       # (tn, 1)
    z2 = jnp.sum(z * z, axis=-1, keepdims=True)       # (tn, 1)

    # cos = dot / (max(||p||, eps) * max(||z||, eps))
    #     = dot * rsqrt(max(p2, eps^2) * max(z2, eps^2))   (EUP rsqrt, exact semantics)
    denom2 = jnp.maximum(p2, _EPS2) * jnp.maximum(z2, _EPS2)
    cos = dot * jax.lax.rsqrt(denom2)                  # (tn, 1)

    # Vector accumulator; cross-sublane reduction deferred to the final step.
    acc_ref[...] += cos

    @pl.when(i == pl.num_programs(1) - 1)
    def _():
        partial = -(jnp.sum(acc_ref[...]) / jnp.float32(total_rows))
        o_ref[...] = partial.reshape(1, 1, 1)


def _pick_row_tile(N, D, pack, itemsize_sum, vmem_budget_bytes):
    """Largest multiple of `pack` that divides N and fits the double-buffered budget."""
    # 2 pipeline buffers per input block; both inputs counted via itemsize_sum.
    tn_cap = vmem_budget_bytes // (2 * D * itemsize_sum)
    tn_cap = min(int(tn_cap), N)
    tn_cap = (tn_cap // pack) * pack
    for t in range(tn_cap, pack - 1, -pack):
        if N % t == 0:
            return t
    return None


def simsiam_loss(P, Z, *, row_tile=None, vmem_budget_bytes=32 * 1024 * 1024):
    """Compute -mean(cosine_similarity(P, Z, dim=-1)) with a Pallas TPU kernel.

    P, Z: (N, D) arrays (float32 or bfloat16). Returns a float32 scalar.
    """
    assert P.shape == Z.shape and P.ndim == 2
    Z = jax.lax.stop_gradient(Z)  # Z.detach() in the PyTorch reference (forward no-op)
    N, D = P.shape

    itemsizes = (jnp.dtype(P.dtype).itemsize, jnp.dtype(Z.dtype).itemsize)
    # Sublane packing: 8 rows for 32-bit, 16 for 16-bit, 32 for 8-bit dtypes.
    pack = max(8, max(8 * (4 // it) for it in itemsizes if it <= 4))

    # Tiny feature dims (< 1 lane tile) or too few rows: the kernel cannot pay
    # for itself (25% lane efficiency at D=32, launch overhead dominates).
    if D < 128 or N < pack:
        return _simsiam_loss_jax(P, Z)

    if row_tile is not None:
        tn = int(row_tile)
        assert tn % pack == 0 and N % tn == 0, (tn, pack, N)
    else:
        tn = _pick_row_tile(N, D, pack, sum(itemsizes), vmem_budget_bytes)
        if tn is None:
            return _simsiam_loss_jax(P, Z)

    n_blocks = N // tn
    # Shard the row loop across the two v7x TensorCores when possible; a size-1
    # parallel axis is harmless on single-core chips (v5e/v6e).
    C = 2 if (n_blocks >= 2 and n_blocks % 2 == 0) else 1
    inner = n_blocks // C

    # Explicit VMEM limit: actual double-buffered footprint + margin, capped so it
    # also fits v7x's 64 MiB physical VMEM.
    block_bytes = tn * D * sum(itemsizes)
    vmem_limit = int(min(max(2 * block_bytes + (4 << 20), 32 << 20), 60 << 20))

    kernel = functools.partial(_simsiam_loss_kernel, total_rows=N)

    partials = pl.pallas_call(
        kernel,
        out_shape=jax.ShapeDtypeStruct((C, 1, 1), jnp.float32),
        grid_spec=pltpu.PrefetchScalarGridSpec(
            num_scalar_prefetch=0,
            grid=(C, inner),
            in_specs=[
                pl.BlockSpec((tn, D), lambda c, i: (c * inner + i, 0)),
                pl.BlockSpec((tn, D), lambda c, i: (c * inner + i, 0)),
            ],
            out_specs=pl.BlockSpec((1, 1, 1), lambda c, i: (c, 0, 0)),
            scratch_shapes=[pltpu.VMEM((tn, 1), jnp.float32)],
        ),
        compiler_params=pltpu.CompilerParams(
            dimension_semantics=("parallel", "arbitrary"),
            vmem_limit_bytes=vmem_limit,
        ),
    )(P, Z)
    return jnp.sum(partials)


if __name__ == "__main__":
    key = jax.random.PRNGKey(0)
    kp, kz = jax.random.split(key)

    # 1) Multi-step kernel path: forces 8 row-blocks -> (2, 4) grid (core split +
    #    accumulation across inner steps).
    N, D = 512, 256
    P = jax.random.normal(kp, (N, D), dtype=jnp.float32)
    Z = jax.random.normal(kz, (N, D), dtype=jnp.float32)
    loss = jax.block_until_ready(simsiam_loss(P, Z, row_tile=64))
    ref = jax.block_until_ready(_simsiam_loss_jax(P, Z))
    assert jnp.allclose(loss, ref, atol=1e-5, rtol=1e-5), (loss, ref)

    # 2) Single-block kernel path with auto-sized tile.
    N2, D2 = 64, 256
    P2 = jax.random.normal(kp, (N2, D2), dtype=jnp.float32)
    Z2 = jax.random.normal(kz, (N2, D2), dtype=jnp.float32)
    loss2 = jax.block_until_ready(simsiam_loss(P2, Z2))
    ref2 = jax.block_until_ready(_simsiam_loss_jax(P2, Z2))
    assert jnp.allclose(loss2, ref2, atol=1e-5, rtol=1e-5), (loss2, ref2)

    # 3) bfloat16 inputs (halved HBM traffic; 16-row sublane packing respected).
    P3 = jax.random.normal(kp, (128, 256), dtype=jnp.bfloat16)
    Z3 = jax.random.normal(kz, (128, 256), dtype=jnp.bfloat16)
    loss3 = jax.block_until_ready(simsiam_loss(P3, Z3))
    ref3 = jax.block_until_ready(_simsiam_loss_jax(P3, Z3))
    assert jnp.allclose(loss3, ref3, atol=1e-5, rtol=1e-5), (loss3, ref3)

    # 4) Tiny feature dim -> pure-JAX fallback (no kernel launch).
    P4 = jax.random.normal(kp, (16, 32), dtype=jnp.float32)
    Z4 = jax.random.normal(kz, (16, 32), dtype=jnp.float32)
    loss4 = jax.block_until_ready(simsiam_loss(P4, Z4))
    ref4 = jax.block_until_ready(_simsiam_loss_jax(P4, Z4))
    assert jnp.allclose(loss4, ref4, atol=1e-5, rtol=1e-5), (loss4, ref4)

    print("KERNEL_OK")
</pallas_src>

<mosaic_0001>
module attributes {stable_mosaic.version = 11 : i64} {
  func.func @_simsiam_loss_kernel(%arg0: i32, %arg1: i32, %arg2: memref<64x256xf32, #tpu.memory_space<vmem>>, %arg3: memref<64x256xf32, #tpu.memory_space<vmem>>, %arg4: memref<1x1x1xf32, #tpu.memory_space<vmem>>, %arg5: memref<64x1xf32, #tpu.memory_space<vmem>>) attributes {dimension_semantics = [#tpu.dimension_semantics<parallel>, #tpu.dimension_semantics<arbitrary>], iteration_bounds = array<i64: 2, 4>, scalar_prefetch = 0 : i64, scratch_operands = 1 : i64, tpu.core_type = #tpu.core_type<tc>, window_params = [{transform_indices = @transform_0, window_bounds = array<i64: 64, 256>}, {transform_indices = @transform_1, window_bounds = array<i64: 64, 256>}, {transform_indices = @transform_2, window_bounds = array<i64: 1, 1, 1>}]} {
    %c0_i32 = arith.constant 0 : i32
    %0 = arith.cmpi eq, %arg1, %c0_i32 : i32
    %1 = arith.extui %0 : i1 to i32
    %c0_i32_0 = arith.constant 0 : i32
    %2 = arith.cmpi ne, %1, %c0_i32_0 : i32
    scf.if %2 {
      %cst_13 = arith.constant 0.000000e+00 : f32
      %27 = vector.broadcast %cst_13 : f32 to vector<64x1xf32>
      %c0_14 = arith.constant 0 : index
      %c0_15 = arith.constant 0 : index
      %28 = vector.load %arg5[%c0_14, %c0_15] : memref<64x1xf32, #tpu.memory_space<vmem>>, vector<64x1xf32>
      tpu.vector_store %arg5[%c0_14, %c0_15], %27 {strides = array<i32>} : memref<64x1xf32, #tpu.memory_space<vmem>>, vector<64x1xf32>,
    } else {
    }
    %c0 = arith.constant 0 : index
    %c0_1 = arith.constant 0 : index
    %3 = vector.load %arg2[%c0, %c0_1] : memref<64x256xf32, #tpu.memory_space<vmem>>, vector<64x256xf32>
    %c0_2 = arith.constant 0 : index
    %c0_3 = arith.constant 0 : index
    %4 = vector.load %arg3[%c0_2, %c0_3] : memref<64x256xf32, #tpu.memory_space<vmem>>, vector<64x256xf32>
    %5 = arith.mulf %3, %4 : vector<64x256xf32>
    %cst = arith.constant dense<0.000000e+00> : vector<64xf32>
    %6 = vector.multi_reduction <add>, %5, %cst [1] : vector<64x256xf32> to vector<64xf32>
    %7 = vector.shape_cast %6 : vector<64xf32> to vector<64x1xf32>
    %8 = arith.mulf %3, %3 : vector<64x256xf32>
    %cst_4 = arith.constant dense<0.000000e+00> : vector<64xf32>
    %9 = vector.multi_reduction <add>, %8, %cst_4 [1] : vector<64x256xf32> to vector<64xf32>
    %10 = vector.shape_cast %9 : vector<64xf32> to vector<64x1xf32>
    %11 = arith.mulf %4, %4 : vector<64x256xf32>
    %cst_5 = arith.constant dense<0.000000e+00> : vector<64xf32>
    %12 = vector.multi_reduction <add>, %11, %cst_5 [1] : vector<64x256xf32> to vector<64xf32>
    %13 = vector.shape_cast %12 : vector<64xf32> to vector<64x1xf32>
    %cst_6 = arith.constant 1.000000e-16 : f32
    %14 = vector.broadcast %cst_6 : f32 to vector<64x1xf32>
    %15 = arith.maximumf %10, %14 : vector<64x1xf32>
    %cst_7 = arith.constant 1.000000e-16 : f32
    %16 = vector.broadcast %cst_7 : f32 to vector<64x1xf32>
    %17 = arith.maximumf %13, %16 : vector<64x1xf32>
    %18 = arith.mulf %15, %17 : vector<64x1xf32>
    %19 = math.rsqrt %18 : vector<64x1xf32>
    %20 = arith.mulf %7, %19 : vector<64x1xf32>
    %c0_8 = arith.constant 0 : index
    %c0_9 = arith.constant 0 : index
    %21 = vector.load %arg5[%c0_8, %c0_9] : memref<64x1xf32, #tpu.memory_space<vmem>>, vector<64x1xf32>
    %22 = arith.addf %21, %20 : vector<64x1xf32>
    %c0_10 = arith.constant 0 : index
    %c0_11 = arith.constant 0 : index
    %23 = vector.load %arg5[%c0_10, %c0_11] : memref<64x1xf32, #tpu.memory_space<vmem>>, vector<64x1xf32>
    tpu.vector_store %arg5[%c0_10, %c0_11], %22 {strides = array<i32>} : memref<64x1xf32, #tpu.memory_space<vmem>>, vector<64x1xf32>,
    %c3_i32 = arith.constant 3 : i32
    %24 = arith.cmpi eq, %arg1, %c3_i32 : i32
    %25 = arith.extui %24 : i1 to i32
    %c0_i32_12 = arith.constant 0 : i32
    %26 = arith.cmpi ne, %25, %c0_i32_12 : i32
    scf.if %26 {
      %c0_13 = arith.constant 0 : index
      %c0_14 = arith.constant 0 : index
      %27 = vector.load %arg5[%c0_13, %c0_14] : memref<64x1xf32, #tpu.memory_space<vmem>>, vector<64x1xf32>
      %28 = vector.shape_cast %27 : vector<64x1xf32> to vector<1x64x1xf32>
      %cst_15 = arith.constant dense<0.000000e+00> : vector<1xf32>
      %29 = vector.multi_reduction <add>, %28, %cst_15 [1, 2] : vector<1x64x1xf32> to vector<1xf32>
      %30 = vector.shape_cast %29 : vector<1xf32> to vector<1x1x1xf32>
      %31 = vector.extract %30[0, 0, 0] : f32 from vector<1x1x1xf32>
      %cst_16 = arith.constant 5.120000e+02 : f32
      %32 = arith.divf %31, %cst_16 : f32
      %cst_17 = arith.constant 0.000000e+00 : f32
      %33 = arith.subf %cst_17, %32 : f32
      %34 = vector.broadcast %33 : f32 to vector<1x1x1xf32>
      %c0_18 = arith.constant 0 : index
      %c0_19 = arith.constant 0 : index
      %c0_20 = arith.constant 0 : index
      %35 = vector.load %arg4[%c0_18, %c0_19, %c0_20] : memref<1x1x1xf32, #tpu.memory_space<vmem>>, vector<1x1x1xf32>
      tpu.vector_store %arg4[%c0_18, %c0_19, %c0_20], %34 {strides = array<i32>} : memref<1x1x1xf32, #tpu.memory_space<vmem>>, vector<1x1x1xf32>,
    } else {
    }
    return
  }
  func.func @transform_0(%arg0: i32, %arg1: i32) -> (i32, i32) {
    %c4_i32 = arith.constant 4 : i32
    %0 = arith.muli %arg0, %c4_i32 : i32
    %1 = arith.addi %0, %arg1 : i32
    %c0_i32 = arith.constant 0 : i32
    %c0_i32_0 = arith.constant 0 : i32
    return %1, %c0_i32 : i32, i32
  }
  func.func @transform_1(%arg0: i32, %arg1: i32) -> (i32, i32) {
    %c4_i32 = arith.constant 4 : i32
    %0 = arith.muli %arg0, %c4_i32 : i32
    %1 = arith.addi %0, %arg1 : i32
    %c0_i32 = arith.constant 0 : i32
    %c0_i32_0 = arith.constant 0 : i32
    return %1, %c0_i32 : i32, i32
  }
  func.func @transform_2(%arg0: i32, %arg1: i32) -> (i32, i32, i32) {
    %c0_i32 = arith.constant 0 : i32
    %c0_i32_0 = arith.constant 0 : i32
    %c0_i32_1 = arith.constant 0 : i32
    return %arg0, %c0_i32, %c0_i32_0 : i32, i32, i32
  }
}

</mosaic_0001>

<bundles_post_ra>
// kernel: tpu_custom_call.1
= control target key start
LH: loop header
LB: loop body
LE: loop exit
PB: predicated region body
PF: predicated region fallthrough
CT: control target
= control target key end

     0   :  { %s1173_s0 = inlined_call_operand.hbm [shape: f32[512,256], index: 0, kind: input, shape index: {}]   ;;  %s1174_s1 = inlined_call_operand.hbm [shape: f32[512,256], index: 1, kind: input, shape index: {}]   ;;  %s1175_s2 = inlined_call_operand.vmem [shape: f32[2,1,1], index: 2, kind: output, shape index: {}]  }
   0x1   :  { %1176 = sst [smem:[#allocation9_spill]] %s1173_s0 }
   0x2   :  { %7 = vsyncpa [#allocation4], 0 }
   0x3   :  { %9 = vsyncpa [#allocation4 + $0x1], 0 }
   0x4   :  { %10 = vsyncpa [#allocation6], 0 }
   0x5   :  { %12 = vsyncpa [#allocation6 + $0x1], 0  ;;  %s876_s9 = smov 0   ;;  %s878_s10 = smov 0  }
   0x6   :  { %s880_s11 = smov 0   ;;  %s882_s12 = smov 0  }
   0x7   :  { %s884_s13 = smov 0   ;;  %s886_s14 = smov 0  }
   0x8   :  { %s888_s15 = smov 0   ;;  %s890_s16 = smov 0  }
   0x9 LB: > { %s602_s17 = sadd.s32 4294967295, %s854_s16   ;;  %s27_s18 = sadd.s32 1, %s846_s14  ;;  %s854_s16 = sphi %s890_s16, %s18_s16   ;;  %s850_s15 = sphi %s888_s15, %s1188_s15   ;;  %s846_s14 = sphi %s886_s14, %s1187_s14   ;;  %s842_s13 = sphi %s884_s13, %s1186_s13   ;;  %s838_s12 = sphi %s882_s12, %s1185_s12   ;;  %s834_s11 = sphi %s880_s11, %s1184_s11   ;;  %s830_s10 = sphi %s878_s10, %s1183_s10   ;;  %s826_s9 = sphi %s876_s9, %s1182_s9  }
   0xa   : > { %p28_p0 = scmp.ge.s32.totalorder %s27_s18, 4  ;;  %s30_s19 = sadd.s32 1, %s850_s15 }
   0xb   : > { %s604_s20 = sshll.u32 %s850_s15, 2  ;;  %s41_s21 = sadd.s32 1, %s834_s11 }
   0xc   : > { %s1190_s18 = smov (%p28_p0, %s27_s18), 0  ;;  %s1192_s19 = smov (!%p28_p0, %s30_s19), %s850_s15 }
   0xd   : > { %s923_s22 = sadd.s32 %s846_s14, %s604_s20  ;;  %p48_p1 = scmp.ne.s32.totalorder %s834_s11, %s830_s10 }
   0xe   : > { %p32_p2 = scmp.ge.s32.totalorder %s1192_s19, 2  ;;  %p49_p3 = scmp.eq.s32.totalorder %s854_s16, 0 }
   0xf   : > { %p54_p4 = scmp.ne.s32.totalorder %s830_s10, %s826_s9  ;;  %p55_p5 = scmp.eq.s32.totalorder %s602_s17, 0 }
  0x10   : > { %s1194_s19 = smov (%p32_p2, %s1192_s19), 0  ;;  %p931_p6 = por %p49_p3, %p48_p1 }
  0x11   : > { %p935_p7 = por %p55_p5, %p54_p4  ;;  %s605_s25 = sshll.u32 %s1194_s19, 2 }
  0x12   : > { %s37_s26 = sadd.s32 %s605_s25, %s1190_s18  ;;  %p644_p8 = scmp.lt.s32.totalorder %s854_s16, 8 }
  0x13   : > { %s38_s27 = ssub.s32 %s923_s22, %s37_s26  ;;  %s944_s28 = sand.u32 1, %s834_s11  }
  0x14   : > { %p39_p9 = scmp.eq.s32.totalorder %s38_s27, 0  ;;  %s610_s29 = sshll.u32 %s944_s28, 7 }
  0x15   : > { %s628_s30 = sshll.u32 %s923_s22, 11  ;;  %s1179_s0 = sld [smem:[#allocation9_spill]] }
  0x16   : > { %s949_s3 = scalar_select %p39_p9, %s834_s11, %s41_s21  }
  0x17   : > { %s138_s7 = scalar_lea.vmem [#allocation3], %s610_s29  ;;  %p960_p10 = pnand %p644_p8, %p931_p6 }
  0x18   : > { %s148_s8 = sshll.u32 %s138_s7, 4  ;;  %s135_s17 = scalar_lea.sflag [#allocation4], %s944_s28  ;;  %s149_s8 = int_to_ptr.vmem [resolvable:$true] %s148_s8 }
  0x19   : > { %p730_p11 = pneg %p960_p10  ;;  %s741_s20 = scalar_lea.vmem %s149_s8, 2048 }
  0x1a   : > { %p742_p12 = scmp.ne.s32.totalorder %s149_s8, %s741_s20  ;;  %s856_s21 = smov [#allocation3]  }
  0x1b   : > { %s147_s6 = scalar_lea.hbm %s1179_s0, %s628_s30  ;;  %s746_s25 = sshll.u32 %s856_s21, 4  ;;  %s747_s25 = int_to_ptr.vmem [resolvable:$false] %s746_s25 }
  0x1c   : > { %p744_p13 = pnand %p742_p12, %p730_p11  ;;  %s748_s23 = scalar_lea.vmem %s747_s25, 4096 }
  0x1d   : > { %p749_p1 = scmp.lt.s32.totalorder %s149_s8, %s747_s25  ;;  %p750_p2 = scmp.lt.s32.totalorder %s748_s23, %s741_s20 }
  0x1e   : > { %p745_p0 = pneg %p744_p13 }
  0x1f   : > { %p751_p3 = por %p750_p2, %p749_p1 }
  0x21   : > { %p752_p4 = pnand %p751_p3, %p745_p0 }
  0x23   : > { %755 = shalt.err (!%p752_p4)
}
  0x24   : > { %s857_s26 = smov 256   ;;  %s858_s27 = smov 16  }
  0x25   : > { %640 = dma.hbm_to_vmem [thread:$0]  (!%p960_p10), %s147_s6, 2048, %s149_s8, %s135_s17, %s857_s26, %s857_s26, %s858_s27  }
  0x26   : > { %p620_p5 = scmp.ge.s32.totalorder %s854_s16, 1  ;;  %p180_p6 = scmp.lt.s32.totalorder %s854_s16, 9 }
  0x27   : > { %s171_s20 = scalar_lea.hbm %s1174_s1, %s628_s30  ;;  %s162_s21 = scalar_lea.vmem [#allocation5], %s610_s29 }
  0x28   : > { %p974_p8 = pnand %p620_p5, %p180_p6  ;;  %s172_s25 = sshll.u32 %s162_s21, 4  ;;  %s173_s25 = int_to_ptr.vmem [resolvable:$true] %s172_s25 }
  0x29   : > { %s159_s23 = scalar_lea.sflag [#allocation6], %s944_s28  ;;  %s769_s0 = scalar_lea.vmem %s173_s25, 2048 }
  0x2a   : > { %p770_p9 = scmp.ne.s32.totalorder %s173_s25, %s769_s0  ;;  %s859_s6 = smov [#allocation5]  }
  0x2b   : > { %s774_s8 = sshll.u32 %s859_s6, 4  ;;  %s775_s8 = int_to_ptr.vmem [resolvable:$false] %s774_s8 }
  0x2c   : > { %p772_p12 = pnand %p770_p9, %p730_p11  ;;  %s776_s17 = scalar_lea.vmem %s775_s8, 4096 }
  0x2d   : > { %p777_p0 = scmp.lt.s32.totalorder %s173_s25, %s775_s8  ;;  %p778_p1 = scmp.lt.s32.totalorder %s776_s17, %s769_s0 }
  0x2e   : > { %p773_p13 = pneg %p772_p12 }
  0x2f   : > { %p779_p2 = por %p778_p1, %p777_p0 }
  0x31   : > { %p780_p3 = pnand %p779_p2, %p773_p13 }
  0x33   : > { %783 = shalt.err (!%p780_p3)
}
  0x34   : > { %643 = dma.hbm_to_vmem [thread:$0]  (!%p960_p10), %s171_s20, 2048, %s173_s25, %s159_s23, %s857_s26, %s857_s26, %s858_s27  }
  0x35   : > { %184 = sbr.rel (%p974_p8) target bundleno = 490 (0x1ea), region = 28  ;;  %s186_s22 = sand.u32 (!%p974_p8), 1, %s830_s10  }
  0x36   : > { %s621_s28 = sshll.u32 (!%p974_p8), %s186_s22, 7  ;;  %s187_s29 = scalar_lea.sflag (!%p974_p8), [#allocation4], %s186_s22 }
  0x37   : > { %s994_s30 = scalar_lea.vmem (!%p974_p8), [#allocation3], %s621_s28 }
  0x3a   : > { %817 = dma.done.wait (%p935_p7), %s187_s29, 2048  }
  0x3b   : > { %819 = vsyncadd (%p935_p7), %s187_s29, 4294965248  ;;  %s196_s0 = scalar_lea.sflag [#allocation6], %s186_s22  ;;  %s1000_s5 = scalar_lea.vmem [#allocation5], %s621_s28 }
  0x3c   : > { %821 = dma.done.wait (%p935_p7), %s196_s0, 2048  }
  0x3d   : > { %823 = vsyncadd (%p935_p7), %s196_s0, 4294965248  ;;  %p229_p10 = scmp.lt.s32.totalorder %s842_s13, 1  ;;  %p623_p11 = scmp.ne.s32.totalorder %s838_s12, 0 }
  0x3f   : > { %s1196_s13 = smov (!%p229_p10, %s842_s13), 1  ;;  %235 = sbr.rel (%p623_p11) target bundleno = 73 (0x49), region = 40 }
  0x40   : > { %s231_s27 = scalar_lea.vmem %s1175_s2, %s1196_s13 }
  0x44   : > { %vm236_vm0 = vcmask 7168   ;;  %v860_v0 = vmov 0.0  }
  0x45   : > { %237 = vst.msk [vmem:[#allocation2] sm:$0xff] %vm236_vm0, %v860_v0  ;;  %238 = vst.msk [vmem:[#allocation2 + $0x8] sm:$0xff] %vm236_vm0, %v860_v0 }
  0x46   : > { %239 = vst.msk [vmem:[#allocation2 + $0x10] sm:$0xff] %vm236_vm0, %v860_v0  ;;  %240 = vst.msk [vmem:[#allocation2 + $0x18] sm:$0xff] %vm236_vm0, %v860_v0 }
  0x47   : > { %241 = vst.msk [vmem:[#allocation2 + $0x20] sm:$0xff] %vm236_vm0, %v860_v0  ;;  %242 = vst.msk [vmem:[#allocation2 + $0x28] sm:$0xff] %vm236_vm0, %v860_v0 }
  0x48   : > { %243 = vst.msk [vmem:[#allocation2 + $0x30] sm:$0xff] %vm236_vm0, %v860_v0  ;;  %244 = vst.msk [vmem:[#allocation2 + $0x38] sm:$0xff] %vm236_vm0, %v860_v0 }
  0x49 PF: > { %v1016_v1 = vld [vmem:[%s994_s30 + $0x20] sm:$0xff]  ;;  %v1019_v2 = vld [vmem:[%s994_s30 + $0x28] sm:$0xff]  ;;  %v1034_v8 = vld [vmem:[%s994_s30 + $0x30] sm:$0xff]  ;;  %vm453_vm1 = vcmask 7168   ;;  %p624_p7 = scmp.ne.s32.totalorder %s838_s12, 3 }
  0x4a   : > { %v1022_v3 = vld [vmem:[%s994_s30] sm:$0xff]  ;;  %v321_v4 = vmul.f32 %v1016_v1, %v1016_v1  ;;  %v322_v5 = vmul.f32 %v1019_v2, %v1019_v2  ;;  %v1029_v6 = vld [vmem:[%s994_s30 + $0x8] sm:$0xff]  ;;  %v1037_v9 = vld [vmem:[%s994_s30 + $0x38] sm:$0xff]  ;;  %v323_v11 = vmul.f32 %v1034_v8, %v1034_v8 }
  0x4b   : > { %v317_v7 = vmul.f32 %v1022_v3, %v1022_v3  ;;  %v318_v10 = vmul.f32 %v1029_v6, %v1029_v6  ;;  %v324_v12 = vmul.f32 %v1037_v9, %v1037_v9  ;;  %v1046_v13 = vld [vmem:[%s994_s30 + $0x10] sm:$0xff]  ;;  %v1049_v14 = vld [vmem:[%s994_s30 + $0x18] sm:$0xff]  ;;  %v1062_v20 = vld [vmem:[%s994_s30 + $0x40] sm:$0xff] }
  0x4c   : > { %v1052_v15 = vld [vmem:[%s994_s30 + $0x50] sm:$0xff]  ;;  %v339_v16 = vadd.f32 %v322_v5, %v321_v4  ;;  %v319_v17 = vmul.f32 %v1046_v13, %v1046_v13  ;;  %v320_v18 = vmul.f32 %v1049_v14, %v1049_v14  ;;  %v1059_v19 = vld [vmem:[%s994_s30 + $0x58] sm:$0xff]  ;;  %v1065_v21 = vld [vmem:[%s994_s30 + $0x48] sm:$0xff]  ;;  %v325_v27 = vmul.f32 %v1062_v20, %v1062_v20 }
  0x4d   : > { %v333_v22 = vadd.f32 %v318_v10, %v317_v7  ;;  %v342_v23 = vadd.f32 %v324_v12, %v323_v11  ;;  %v327_v24 = vmul.f32 %v1052_v15, %v1052_v15  ;;  %v328_v25 = vmul.f32 %v1059_v19, %v1059_v19  ;;  %v1076_v29 = vld [vmem:[%s994_s30 + $0x70] sm:$0xff]  ;;  %v1079_v30 = vld [vmem:[%s994_s30 + $0x78] sm:$0xff]  ;;  %v1082_v31 = vld [vmem:[%s994_s30 + $0x60] sm:$0xff] }
  0x4e   : > { %340 = vadd.xlane.f32.xlu1 %v339_v16  ;;  %v336_v26 = vadd.f32 %v320_v18, %v319_v17  ;;  %v326_v28 = vmul.f32 %v1065_v21, %v1065_v21  ;;  %v1085_v32 = vld [vmem:[%s994_s30 + $0x68] sm:$0xff]  ;;  %v331_v34 = vmul.f32 %v1076_v29, %v1076_v29  ;;  %v332_v35 = vmul.f32 %v1079_v30, %v1079_v30  ;;  %v263_v39 = vld [vmem:[%s1000_s5 + $0x10] sm:$0xff]  ;;  %v264_v40 = vld [vmem:[%s1000_s5 + $0x18] sm:$0xff] }
  0x4f   : > { %334 = vadd.xlane.f32.xlu0 %v333_v22  ;;  %v348_v33 = vadd.f32 %v328_v25, %v327_v24  ;;  %v329_v37 = vmul.f32 %v1082_v31, %v1082_v31  ;;  %v330_v38 = vmul.f32 %v1085_v32, %v1085_v32  ;;  %v261_v41 = vld [vmem:[%s1000_s5] sm:$0xff]  ;;  %v262_v42 = vld [vmem:[%s1000_s5 + $0x8] sm:$0xff]  ;;  %v359_v44 = vmul.f32 %v263_v39, %v263_v39  ;;  %v267_v49 = vld [vmem:[%s1000_s5 + $0x30] sm:$0xff] }
  0x50   : > { %v345_v36 = vadd.f32 %v326_v28, %v325_v27  ;;  %v354_v43 = vadd.f32 %v332_v35, %v331_v34  ;;  %v360_v45 = vmul.f32 %v264_v40, %v264_v40  ;;  %v357_v47 = vmul.f32 %v261_v41, %v261_v41  ;;  %v268_v50 = vld [vmem:[%s1000_s5 + $0x38] sm:$0xff]  ;;  %v265_v51 = vld [vmem:[%s1000_s5 + $0x20] sm:$0xff]  ;;  %v266_v52 = vld [vmem:[%s1000_s5 + $0x28] sm:$0xff] }
  0x51   : > { %v351_v46 = vadd.f32 %v330_v38, %v329_v37  ;;  %v358_v48 = vmul.f32 %v262_v42, %v262_v42  ;;  %v363_v54 = vmul.f32 %v267_v49, %v267_v49  ;;  %v364_v55 = vmul.f32 %v268_v50, %v268_v50  ;;  %v271_v59 = vld [vmem:[%s1000_s5 + $0x50] sm:$0xff]  ;;  %v272_v60 = vld [vmem:[%s1000_s5 + $0x58] sm:$0xff]  ;;  %v269_v61 = vld [vmem:[%s1000_s5 + $0x40] sm:$0xff] }
  0x52   : > { %343 = vadd.xlane.f32.xlu1 %v342_v23  ;;  %v376_v53 = vadd.f32 %v360_v45, %v359_v44  ;;  %v361_v57 = vmul.f32 %v265_v51, %v265_v51  ;;  %v362_v58 = vmul.f32 %v266_v52, %v266_v52  ;;  %v270_v62 = vld [vmem:[%s1000_s5 + $0x48] sm:$0xff]  ;;  %v367_v0 = vmul.f32 %v271_v59, %v271_v59  ;;  %v275_v11 = vld [vmem:[%s1000_s5 + $0x70] sm:$0xff]  ;;  %v276_v12 = vld [vmem:[%s1000_s5 + $0x78] sm:$0xff] }
  0x53   : > { %337 = vadd.xlane.f32.xlu0 %v336_v26  ;;  %v373_v56 = vadd.f32 %v358_v48, %v357_v47  ;;  %v382_v63 = vadd.f32 %v364_v55, %v363_v54  ;;  %v368_v4 = vmul.f32 %v272_v60, %v272_v60  ;;  %v365_v7 = vmul.f32 %v269_v61, %v269_v61  ;;  %v273_v16 = vld [vmem:[%s1000_s5 + $0x60] sm:$0xff]  ;;  %v274_v17 = vld [vmem:[%s1000_s5 + $0x68] sm:$0xff] }
  0x54   : > { %v379_v5 = vadd.f32 %v362_v58, %v361_v57  ;;  %v366_v10 = vmul.f32 %v270_v62, %v270_v62  ;;  %v371_v22 = vmul.f32 %v275_v11, %v275_v11  ;;  %v372_v23 = vmul.f32 %v276_v12, %v276_v12 }
  0x55   : > { %v388_v18 = vadd.f32 %v368_v4, %v367_v0  ;;  %v369_v25 = vmul.f32 %v273_v16, %v273_v16  ;;  %v370_v26 = vmul.f32 %v274_v17, %v274_v17  ;;  %v279_v28 = vmul.f32 %v263_v39, %v1046_v13 }
  0x56   : > { %349 = vadd.xlane.f32.xlu1 %v348_v33  ;;  %v385_v24 = vadd.f32 %v366_v10, %v365_v7  ;;  %v394_v27 = vadd.f32 %v372_v23, %v371_v22  ;;  %v280_v33 = vmul.f32 %v264_v40, %v1049_v14  ;;  %v277_v35 = vmul.f32 %v261_v41, %v1022_v3 }
  0x57   : > { %346 = vadd.xlane.f32.xlu0 %v345_v36  ;;  %v391_v34 = vadd.f32 %v370_v26, %v369_v25  ;;  %v278_v36 = vmul.f32 %v262_v42, %v1029_v6  ;;  %v283_v38 = vmul.f32 %v267_v49, %v1034_v8  ;;  %v281_v45 = vmul.f32 %v265_v51, %v1016_v1 }
  0x58   : > { %v296_v37 = vadd.f32 %v280_v33, %v279_v28  ;;  %v282_v13 = vmul.f32 %v266_v52, %v1019_v2  ;;  %v287_v39 = vmul.f32 %v271_v59, %v1052_v15  ;;  %v288_v3 = vmul.f32 %v272_v60, %v1059_v19 }
  0x59   : > { %v293_v44 = vadd.f32 %v278_v36, %v277_v35  ;;  %v285_v40 = vmul.f32 %v269_v61, %v1062_v20  ;;  %v286_v8 = vmul.f32 %v270_v62, %v1065_v21  ;;  %v291_v41 = vmul.f32 %v275_v11, %v1076_v29  ;;  %v438_v36 = vld [vmem:[#allocation2 + $0x8] sm:$0xff] }
  0x5a   : > { %355 = vadd.xlane.f32.xlu1 %v354_v43  ;;  %v284_v43 = vmul.f32 %v268_v50, %v1037_v9  ;;  %v299_v6 = vadd.f32 %v282_v13, %v281_v45  ;;  %v308_v9 = vadd.f32 %v288_v3, %v287_v39  ;;  %v292_v1 = vmul.f32 %v276_v12, %v1079_v30 }
  0x5b   : > { %352 = vadd.xlane.f32.xlu0 %v351_v46  ;;  %v305_v2 = vadd.f32 %v286_v8, %v285_v40  ;;  %v289_v42 = vmul.f32 %v273_v16, %v1082_v31  ;;  %v290_v15 = vmul.f32 %v274_v17, %v1085_v32 }
  0x5c   : > { %v302_v14 = vadd.f32 %v284_v43, %v283_v38  ;;  %v314_v19 = vadd.f32 %v292_v1, %v291_v41  ;;  %v437_v43 = vld [vmem:[#allocation2] sm:$0xff] }
  0x5d   : > { %v311_v46 = vadd.f32 %v290_v15, %v289_v42 }
  0x5e   : > { %377 = vadd.xlane.f32.xlu1 %v376_v53 }
  0x5f   : > { %374 = vadd.xlane.f32.xlu0 %v373_v56 }
  0x62   : > { %383 = vadd.xlane.f32.xlu1 %v382_v63 }
  0x63   : > { %380 = vadd.xlane.f32.xlu0 %v379_v5 }
  0x66   : > { %389 = vadd.xlane.f32.xlu1 %v388_v18 }
  0x67   : > { %386 = vadd.xlane.f32.xlu0 %v385_v24 }
  0x6a   : > { %395 = vadd.xlane.f32.xlu1 %v394_v27 }
  0x6b   : > { %392 = vadd.xlane.f32.xlu0 %v391_v34 }
  0x6e   : > { %297 = vadd.xlane.f32.xlu1 %v296_v37 }
  0x6f   : > { %294 = vadd.xlane.f32.xlu0 %v293_v44 }
  0x72   : > { %303 = vadd.xlane.f32.xlu1 %v302_v14 }
  0x73   : > { %300 = vadd.xlane.f32.xlu0 %v299_v6  ;;  %v440_v6 = vld [vmem:[#allocation2 + $0x18] sm:$0xff] }
  0x76   : > { %309 = vadd.xlane.f32.xlu1 %v308_v9  ;;  %v439_v9 = vld [vmem:[#allocation2 + $0x10] sm:$0xff] }
  0x77   : > { %306 = vadd.xlane.f32.xlu0 %v305_v2 }
  0x7a   : > { %315 = vadd.xlane.f32.xlu1 %v314_v19 }
  0x7b   : > { %312 = vadd.xlane.f32.xlu0 %v311_v46  ;;  %v442_v46 = vld [vmem:[#allocation2 + $0x28] sm:$0xff] }
  0xd7   : > { %v341_v20 = vpop.xlane.xlu1 %340 }
  0xd8   : > { %v335_v21 = vpop.xlane.xlu0 %334  ;;  %v399_v61 = vmax.f32 %v341_v20, 1e-16 }
  0xd9   : > { %v397_v54 = vmax.f32 %v335_v21, 1e-16 }
  0xdb   : > { %v344_v47 = vpop.xlane.xlu1 %343 }
  0xdc   : > { %v338_v48 = vpop.xlane.xlu0 %337  ;;  %v400_v58 = vmax.f32 %v344_v47, 1e-16  ;;  %v441_v47 = vld [vmem:[#allocation2 + $0x20] sm:$0xff] }
  0xdd   : > { %v398_v52 = vmax.f32 %v338_v48, 1e-16 }
  0xdf   : > { %v350_v49 = vpop.xlane.xlu1 %349 }
  0xe0   : > { %v347_v29 = vpop.xlane.xlu0 %346  ;;  %v402_v5 = vmax.f32 %v350_v49, 1e-16 }
  0xe1   : > { %v401_v11 = vmax.f32 %v347_v29, 1e-16 }
  0xe3   : > { %v356_v50 = vpop.xlane.xlu1 %355 }
  0xe4   : > { %v353_v30 = vpop.xlane.xlu0 %352  ;;  %v404_v22 = vmax.f32 %v356_v50, 1e-16 }
  0xe5   : > { %v403_v25 = vmax.f32 %v353_v30, 1e-16 }
  0xe7   : > { %v378_v51 = vpop.xlane.xlu1 %377 }
  0xe8   : > { %v406_v53 = vmax.f32 %v378_v51, 1e-16  ;;  %v375_v31 = vpop.xlane.xlu0 %374 }
  0xe9   : > { %v405_v32 = vmax.f32 %v375_v31, 1e-16 }
  0xea   : > { %v414_v55 = vmul.f32 %v406_v53, %v398_v52  ;;  %v444_v52 = vld [vmem:[#allocation2 + $0x38] sm:$0xff] }
  0xeb   : > { %v413_v56 = vmul.f32 %v405_v32, %v397_v54  ;;  %v384_v57 = vpop.xlane.xlu1 %383  ;;  %v443_v54 = vld [vmem:[#allocation2 + $0x30] sm:$0xff] }
  0xec   : > { %712 = vrsqrt.f32 %v414_v55  ;;  %v408_v59 = vmax.f32 %v384_v57, 1e-16  ;;  %v381_v60 = vpop.xlane.xlu0 %380 }
  0xed   : > { %714 = vrsqrt.f32 %v413_v56  ;;  %v407_v62 = vmax.f32 %v381_v60, 1e-16 }
  0xee   : > { %v416_v63 = vmul.f32 %v408_v59, %v400_v58 }
  0xef   : > { %v415_v0 = vmul.f32 %v407_v62, %v399_v61  ;;  %v390_v4 = vpop.xlane.xlu1 %389 }
  0xf0   : > { %716 = vrsqrt.f32 %v416_v63  ;;  %v410_v7 = vmax.f32 %v390_v4, 1e-16  ;;  %v387_v10 = vpop.xlane.xlu0 %386 }
  0xf1   : > { %718 = vrsqrt.f32 %v415_v0  ;;  %v409_v12 = vmax.f32 %v387_v10, 1e-16 }
  0xf2   : > { %v418_v16 = vmul.f32 %v410_v7, %v402_v5 }
  0xf3   : > { %v417_v17 = vmul.f32 %v409_v12, %v401_v11  ;;  %v396_v18 = vpop.xlane.xlu1 %395 }
  0xf4   : > { %720 = vrsqrt.f32 %v418_v16  ;;  %v412_v23 = vmax.f32 %v396_v18, 1e-16  ;;  %v393_v24 = vpop.xlane.xlu0 %392 }
  0xf5   : > { %722 = vrsqrt.f32 %v417_v17  ;;  %v411_v26 = vmax.f32 %v393_v24, 1e-16 }
  0xf6   : > { %v420_v27 = vmul.f32 %v412_v23, %v404_v22 }
  0xf7   : > { %v419_v28 = vmul.f32 %v411_v26, %v403_v25  ;;  %v298_v33 = vpop.xlane.xlu1 %297 }
  0xf8   : > { %724 = vrsqrt.f32 %v420_v27  ;;  %v295_v34 = vpop.xlane.xlu0 %294 }
  0xf9   : > { %v713_v35 = vpop.eup %712  ;;  %726 = vrsqrt.f32 %v419_v28 }
  0xfa   : > { %v715_v37 = vpop.eup %714  ;;  %v430_v38 = vmul.f32 %v713_v35, %v298_v33 }
  0xfb   : > { %v429_v44 = vmul.f32 %v715_v37, %v295_v34  ;;  %v304_v45 = vpop.xlane.xlu1 %303 }
  0xfc   : > { %v446_v13 = vadd.f32 %v438_v36, %v430_v38  ;;  %v301_v14 = vpop.xlane.xlu0 %300 }
  0xfd   : > { %v717_v39 = vpop.eup %716  ;;  %v445_v3 = vadd.f32 %v437_v43, %v429_v44 }
  0xfe   : > { %v719_v40 = vpop.eup %718  ;;  %455 = vst.msk [vmem:[#allocation2 + $0x8] sm:$0xff] %vm453_vm1, %v446_v13  ;;  %v432_v8 = vmul.f32 %v717_v39, %v304_v45 }
  0xff   : > { %454 = vst.msk [vmem:[#allocation2] sm:$0xff] %vm453_vm1, %v445_v3  ;;  %v431_v41 = vmul.f32 %v719_v40, %v301_v14  ;;  %v310_v1 = vpop.xlane.xlu1 %309 }
 0x100   : > { %v448_v2 = vadd.f32 %v440_v6, %v432_v8  ;;  %v307_v42 = vpop.xlane.xlu0 %306 }
 0x101   : > { %v721_v15 = vpop.eup %720  ;;  %v447_v19 = vadd.f32 %v439_v9, %v431_v41 }
 0x102   : > { %v723_v20 = vpop.eup %722  ;;  %457 = vst.msk [vmem:[#allocation2 + $0x18] sm:$0xff] %vm453_vm1, %v448_v2  ;;  %v434_v21 = vmul.f32 %v721_v15, %v310_v1 }
 0x103   : > { %456 = vst.msk [vmem:[#allocation2 + $0x10] sm:$0xff] %vm453_vm1, %v447_v19  ;;  %v433_v48 = vmul.f32 %v723_v20, %v307_v42  ;;  %v316_v49 = vpop.xlane.xlu1 %315 }
 0x104   : > { %v450_v29 = vadd.f32 %v442_v46, %v434_v21  ;;  %v313_v50 = vpop.xlane.xlu0 %312 }
 0x105   : > { %v725_v30 = vpop.eup %724  ;;  %v449_v51 = vadd.f32 %v441_v47, %v433_v48 }
 0x106   : > { %v727_v53 = vpop.eup %726  ;;  %459 = vst.msk [vmem:[#allocation2 + $0x28] sm:$0xff] %vm453_vm1, %v450_v29  ;;  %v436_v31 = vmul.f32 %v725_v30, %v316_v49 }
 0x107   : > { %458 = vst.msk [vmem:[#allocation2 + $0x20] sm:$0xff] %vm453_vm1, %v449_v51  ;;  %v435_v32 = vmul.f32 %v727_v53, %v313_v50  ;;  %465 = sbr.rel (%p624_p7) target bundleno = 490 (0x1ea), region = 44 }
 0x108   : > { %v452_v55 = vadd.f32 %v444_v52, %v436_v31 }
 0x109   : > { %v451_v56 = vadd.f32 %v443_v54, %v435_v32 }
 0x10a   : > { %461 = vst.msk [vmem:[#allocation2 + $0x38] sm:$0xff] %vm453_vm1, %v452_v55 }
 0x10b   : > { %460 = vst.msk [vmem:[#allocation2 + $0x30] sm:$0xff] %vm453_vm1, %v451_v56 }
 0x10c   : > { %v466_v57 = vld [vmem:[#allocation2] sm:$0xff]  ;;  %v467_v58 = vld [vmem:[#allocation2 + $0x8] sm:$0xff]  ;;  %v468_v59 = vld [vmem:[#allocation2 + $0x10] sm:$0xff]  ;;  %vm503_vm2 = vcmask 0  }
 0x10d   : > { %v469_v60 = vld [vmem:[#allocation2 + $0x18] sm:$0xff]  ;;  %v474_v61 = vsel %vm453_vm1, %v466_v57, 0.0  ;;  %v475_v62 = vsel %vm453_vm1, %v467_v58, 0.0  ;;  %v477_v63 = vsel %vm453_vm1, %v468_v59, 0.0  ;;  %v471_v7 = vld [vmem:[#allocation2 + $0x28] sm:$0xff] }
 0x10e   : > { %v470_v0 = vld [vmem:[#allocation2 + $0x20] sm:$0xff]  ;;  %v476_v4 = vadd.f32 %v475_v62, %v474_v61  ;;  %v479_v5 = vsel %vm453_vm1, %v469_v60, 0.0  ;;  %v483_v17 = vsel %vm453_vm1, %v471_v7, 0.0 }
 0x10f   : > { %v481_v11 = vsel %vm453_vm1, %v470_v0, 0.0 }
 0x110   : > { %v478_v10 = vadd.f32 %v477_v63, %v476_v4 }
 0x111   : > { %v473_v18 = vld [vmem:[#allocation2 + $0x38] sm:$0xff] }
 0x112   : > { %v472_v12 = vld [vmem:[#allocation2 + $0x30] sm:$0xff]  ;;  %v480_v16 = vadd.f32 %v479_v5, %v478_v10  ;;  %v487_v25 = vsel %vm453_vm1, %v473_v18, 0.0 }
 0x113   : > { %v485_v23 = vsel %vm453_vm1, %v472_v12, 0.0 }
 0x114   : > { %v482_v22 = vadd.f32 %v481_v11, %v480_v16 }
 0x116   : > { %v484_v24 = vadd.f32 %v483_v17, %v482_v22 }
 0x118   : > { %v486_v26 = vadd.f32 %v485_v23, %v484_v24 }
 0x11a   : > { %v488_v27 = vadd.f32 %v487_v25, %v486_v26 }
 0x11c   : > { %489 = vadd.xlane.f32.xlu0 %v488_v27 }
 0x1a5   : > { %v490_v28 = vpop.xlane.xlu0 %489 }
 0x1a6   : > { %v491_v33 = vrot.slane %v490_v28, 4 }
 0x1a8   : > { %v492_v34 = vadd.f32 %v491_v33, %v490_v28 }
 0x1aa   : > { %v493_v35 = vrot.slane %v492_v34, 2 }
 0x1ac   : > { %v494_v36 = vadd.f32 %v493_v35, %v492_v34 }
 0x1ae   : > { %v495_v37 = vrot.slane %v494_v36, 1 }
 0x1b0   : > { %v496_v38 = vadd.f32 %v495_v37, %v494_v36 }
 0x1b2   : > { %631 = vpush %v496_v38 }
 0x1e3   : > { %s632_s12 = spop %631 }
 0x1e4   : > { %s500_s24 = smul.f32 0.001953125, %s632_s12 }
 0x1e6   : > { %s501_s4 = ssub.f32 0.0, %s500_s24 }
 0x1e8   : > { %v502_v43 = vstv %s501_s4 }
 0x1e9   : > { %504 = vst.msk [vmem:[%s231_s27] sm:$0x1] %vm503_vm2, %v502_v43 }
 0x1ea PF: > { %s18_s16 = sadd.s32 1, %s854_s16   ;;  %s1182_s9 = smov %s830_s10 }
 0x1eb   : > { %p15_p4 = scmp.ge.s32.totalorder %s18_s16, 10   ;;  %s1183_s10 = smov %s834_s11 }
 0x1ec   : > { %s1184_s11 = smov %s949_s3  ;;  %s1185_s12 = smov %s846_s14 }
 0x1ed   : > { %s1186_s13 = smov %s850_s15  ;;  %s1187_s14 = smov %s1190_s18 }
 0x1ee   : > { %s1188_s15 = smov %s1194_s19  ;;  %17 = sbr.rel (!%p15_p4) target bundleno = 9 (0x9), region = 89 }
 0x1f3   :  { %522 = vsyncpa [#allocation4], 1 }
 0x1f4   :  { %524 = vsyncpa [#allocation4 + $0x1], 1 }
 0x1f5   :  { %525 = vsyncpa [#allocation6], 1 }
 0x1f6   :  { %527 = vsyncpa [#allocation6 + $0x1], 1 }

</bundles_post_ra>
